<compile_context>
chip_gen: v6e
topology: v6e:2x2x1
jax: 0.10.0
libtpu: 0.0.40
codegen_flags: <defaults>
</compile_context>

<pallas_src>
import jax
import jax.numpy as jnp
import numpy as np
from jax.experimental import pallas as pl
from jax.experimental.pallas import tpu as pltpu


def _make_kernel(L, Cp, Hp, Wp, NB, Sp):
    """Build the fused kernel for static dims."""
    ST = NB * Sp                              # lanes per grid step (multiple of 128)
    G = ((Wp + 1 + 127) // 128) * 128         # lane-aligned guard >= max tap shift

    def kernel(x_ref, w_ref, scale_ref, shift_ref, mask_ref, out_ref,
               act_ref, col_ref):
        # x_ref    : (1, Cp, ST)        f32  padded-flat input for NB images
        # w_ref    : (L, Cp, 9*Cp)      f32  packed per-layer conv weights
        # scale_ref: (L, Cp, 1)         f32  folded BatchNorm scale
        # shift_ref: (L, Cp, 1)         f32  folded BatchNorm shift
        # mask_ref : (1, ST)            f32  1.0 on real pixels, 0.0 on pad/lane-pad
        # out_ref  : (1, Cp, ST)        f32  residual accumulator (padded-flat)
        # act_ref  : (Cp, G + ST + G)   f32  guard-banded activation scratch
        # col_ref  : (9*Cp, ST)         f32  im2col scratch (one matmul RHS / layer)
        x0 = x_ref[0]                          # (Cp, ST)
        mask = mask_ref[...]                   # (1, ST)

        # Guard bands zeroed every step: both are full-width, 128-aligned
        # stores (cheap), and per-core scratch contents are undefined, so this
        # keeps stale NaNs out of the guards even when the grid is sharded
        # across TensorCores (mask*NaN would not recover).
        act_ref[:, :G] = jnp.zeros((Cp, G), jnp.float32)
        act_ref[:, G + ST:] = jnp.zeros((Cp, G), jnp.float32)
        act_ref[:, G:G + ST] = x0              # aligned, unmasked store

        identity = x0                          # (Cp, ST) f32 accumulator

        for l in range(L):                     # static, unrolled
            # im2col: 9 static lane-shifted copies of the activation.
            # Each store is a full Cp(=8)-sublane, lane-aligned tile.
            for t in range(9):
                dh, dw = t // 3, t % 3
                off = (dh - 1) * Wp + (dw - 1)
                col_ref[t * Cp:(t + 1) * Cp, :] = act_ref[:, G + off:G + off + ST]
            # Single packed MXU matmul per layer: (Cp, 9Cp) @ (9Cp, ST).
            y = jnp.dot(w_ref[l], col_ref[...],
                        preferred_element_type=jnp.float32)      # (Cp, ST)
            y = y * scale_ref[l] + shift_ref[l]                   # folded BatchNorm
            y = jnp.maximum(y, 0.0)                               # ReLU
            # TODO(synk): Dropout is eval-mode identity; training mode would use
            # pltpu.prng_seed / pltpu.prng_random_bits with 1/(1-p) scaling.
            identity = identity + y
            if l + 1 < L:
                # Mask only when feeding the next conv (keeps the pad ring and
                # lane padding at zero); the final accumulator's ring is
                # cropped by the wrapper, so the last layer skips the multiply.
                act_ref[:, G:G + ST] = y * mask

        out_ref[0] = identity.astype(out_ref.dtype)

    return kernel


def prepare_params(params, eps=1e-5):
    """Hoisted (once per parameter set): fold BN, pack + channel-pad weights.

    params: list of (conv_w_OIHW, gamma, beta, running_mean, running_var).
    Returns (w_packed [L, Cp, 9*Cp], scale [L, Cp, 1], shift [L, Cp, 1]), all f32,
    with channels zero-padded to Cp = round_up(C, 8).
    """
    C = params[0][0].shape[0]
    Cp = ((C + 7) // 8) * 8
    w_list, sc_list, sh_list = [], [], []
    for (w_oihw, gamma, beta, mean, var) in params:
        co, ci, kh, kw = w_oihw.shape
        w = jnp.asarray(w_oihw, jnp.float32)
        w = jnp.pad(w, ((0, Cp - co), (0, Cp - ci), (0, 0), (0, 0)))
        # OIHW -> (Cp, kh, kw, Cp) -> (Cp, 9*Cp): column (dh*3+dw)*Cp + ci
        w_packed = jnp.transpose(w, (0, 2, 3, 1)).reshape(Cp, kh * kw * Cp)
        scale = jnp.asarray(gamma, jnp.float32) / jnp.sqrt(
            jnp.asarray(var, jnp.float32) + eps)
        shift = jnp.asarray(beta, jnp.float32) - jnp.asarray(mean, jnp.float32) * scale
        scale = jnp.pad(scale, (0, Cp - co))   # padded channels: y = relu(0) = 0
        shift = jnp.pad(shift, (0, Cp - co))
        w_list.append(w_packed)
        sc_list.append(scale[:, None])
        sh_list.append(shift[:, None])
    return (jnp.stack(w_list), jnp.stack(sc_list), jnp.stack(sh_list))


@jax.jit
def basic_block_forward(x_nchw, prepared):
    w_packed, scale, shift = prepared
    N, C, H, W = x_nchw.shape
    L, Cp = w_packed.shape[0], w_packed.shape[1]
    Hp, Wp = H + 2, W + 2
    S = Hp * Wp
    Sp = ((S + 127) // 128) * 128                 # lane-aligned per-image flat length

    # Keep >=1 grid step per TensorCore on v7x (2 steps when N is even); the
    # remaining batch is folded into the lane dimension (NB images per step).
    num_steps = 2 if (N % 2 == 0 and N >= 2) else N
    NB = N // num_steps
    ST = NB * Sp

    kernel = _make_kernel(L, Cp, Hp, Wp, NB, Sp)

    # Host-side layout prep (negligible at these shapes; fold into the kernel
    # for ResNet-scale inputs where the extra HBM passes would matter).
    xp = jnp.pad(x_nchw.astype(jnp.float32),
                 ((0, 0), (0, Cp - C), (1, 1), (1, 1))).reshape(N, Cp, S)
    xp = jnp.pad(xp, ((0, 0), (0, 0), (0, Sp - S)))
    xp = xp.reshape(num_steps, NB, Cp, Sp).transpose(0, 2, 1, 3).reshape(
        num_steps, Cp, ST)

    mask = jnp.pad(jnp.ones((H, W), jnp.float32), ((1, 1), (1, 1))).reshape(1, S)
    mask = jnp.pad(mask, ((0, 0), (0, Sp - S)))
    mask = jnp.tile(mask, (1, NB))                                 # (1, ST)

    G = ((Wp + 1 + 127) // 128) * 128

    out = pl.pallas_call(
        kernel,
        out_shape=jax.ShapeDtypeStruct((num_steps, Cp, ST), jnp.float32),
        grid_spec=pltpu.PrefetchScalarGridSpec(
            num_scalar_prefetch=0,
            grid=(num_steps,),
            in_specs=[
                pl.BlockSpec((1, Cp, ST), lambda n: (n, 0, 0)),       # x (padded-flat)
                pl.BlockSpec((L, Cp, 9 * Cp), lambda n: (0, 0, 0)),   # packed weights
                pl.BlockSpec((L, Cp, 1), lambda n: (0, 0, 0)),        # BN scale
                pl.BlockSpec((L, Cp, 1), lambda n: (0, 0, 0)),        # BN shift
                pl.BlockSpec((1, ST), lambda n: (0, 0)),              # validity mask
            ],
            out_specs=pl.BlockSpec((1, Cp, ST), lambda n: (n, 0, 0)),
            scratch_shapes=[
                pltpu.VMEM((Cp, G + ST + G), jnp.float32),            # activation
                pltpu.VMEM((9 * Cp, ST), jnp.float32),                # im2col
            ]),
        compiler_params=pltpu.CompilerParams(
            dimension_semantics=("parallel",)),
    )(xp, w_packed, scale, shift, mask)

    # Padded-flat -> NCHW (drop channel padding, lane padding and the pad ring).
    out = (out.reshape(num_steps, Cp, NB, Sp).transpose(0, 2, 1, 3)
              .reshape(N, Cp, Sp)[:, :C, :S]
              .reshape(N, C, Hp, Wp)[:, :, 1:1 + H, 1:1 + W])
    return out


def _reference_forward(x, params, eps=1e-5):
    """Pure-JAX reference with the same eval-mode semantics (f32 everywhere)."""
    identity = x
    cur = x
    for (w, gamma, beta, mean, var) in params:
        y = jax.lax.conv_general_dilated(
            cur, w, window_strides=(1, 1), padding=((1, 1), (1, 1)),
            dimension_numbers=("NCHW", "OIHW", "NCHW"))
        s = gamma / jnp.sqrt(var + eps)
        y = y * s[None, :, None, None] + (beta - mean * s)[None, :, None, None]
        y = jnp.maximum(y, 0.0)
        identity = identity + y
        cur = y
    return identity


if __name__ == "__main__":
    # Small shapes consistent with the module: inchannel=4, 2 layers.
    N, C, H, W = 2, 4, 16, 16
    number_of_layers = 2

    key = jax.random.PRNGKey(0)
    keys = jax.random.split(key, 1 + 5 * number_of_layers)
    x = jax.random.normal(keys[0], (N, C, H, W), jnp.float32)

    params = []
    for i in range(number_of_layers):
        kw_, kg, kb, km, kv = keys[1 + 5 * i: 1 + 5 * (i + 1)]
        conv_w = 0.1 * jax.random.normal(kw_, (C, C, 3, 3), jnp.float32)  # OIHW, bias=False
        gamma = 1.0 + 0.1 * jax.random.normal(kg, (C,), jnp.float32)
        beta = 0.1 * jax.random.normal(kb, (C,), jnp.float32)
        running_mean = 0.1 * jax.random.normal(km, (C,), jnp.float32)
        running_var = jnp.abs(jax.random.normal(kv, (C,), jnp.float32)) + 0.5
        params.append((conv_w, gamma, beta, running_mean, running_var))

    prepared = prepare_params(params)          # hoisted: done once per param set
    out = basic_block_forward(x, prepared)
    jax.block_until_ready(out)
    assert out.shape == (N, C, H, W)

    ref = _reference_forward(x, params)
    np.testing.assert_allclose(np.asarray(out), np.asarray(ref), rtol=2e-2, atol=2e-2)
    print("KERNEL_OK")
</pallas_src>

<mosaic_0001>
module attributes {stable_mosaic.version = 11 : i64} {
  func.func @kernel(%arg0: i32, %arg1: memref<1x8x384xf32, #tpu.memory_space<vmem>>, %arg2: memref<2x8x72xf32, #tpu.memory_space<vmem>>, %arg3: memref<2x8x1xf32, #tpu.memory_space<vmem>>, %arg4: memref<2x8x1xf32, #tpu.memory_space<vmem>>, %arg5: memref<1x384xf32, #tpu.memory_space<vmem>>, %arg6: memref<1x8x384xf32, #tpu.memory_space<vmem>>, %arg7: memref<8x640xf32, #tpu.memory_space<vmem>>, %arg8: memref<72x384xf32, #tpu.memory_space<vmem>>) attributes {dimension_semantics = [#tpu.dimension_semantics<parallel>], iteration_bounds = array<i64: 2>, scalar_prefetch = 0 : i64, scratch_operands = 2 : i64, tpu.core_type = #tpu.core_type<tc>, window_params = [{transform_indices = @transform_0, window_bounds = array<i64: 1, 8, 384>}, {pipeline_mode = #tpu.pipeline_mode<synchronous>, transform_indices = @transform_1, window_bounds = array<i64: 2, 8, 72>}, {pipeline_mode = #tpu.pipeline_mode<synchronous>, transform_indices = @transform_2, window_bounds = array<i64: 2, 8, 1>}, {pipeline_mode = #tpu.pipeline_mode<synchronous>, transform_indices = @transform_3, window_bounds = array<i64: 2, 8, 1>}, {pipeline_mode = #tpu.pipeline_mode<synchronous>, transform_indices = @transform_4, window_bounds = array<i64: 1, 384>}, {transform_indices = @transform_5, window_bounds = array<i64: 1, 8, 384>}]} {
    %c0 = arith.constant 0 : index
    %c0_0 = arith.constant 0 : index
    %c0_1 = arith.constant 0 : index
    %0 = vector.load %arg1[%c0, %c0_0, %c0_1] : memref<1x8x384xf32, #tpu.memory_space<vmem>>, vector<1x8x384xf32>
    %1 = vector.shape_cast %0 : vector<1x8x384xf32> to vector<8x384xf32>
    %c0_2 = arith.constant 0 : index
    %c0_3 = arith.constant 0 : index
    %2 = vector.load %arg5[%c0_2, %c0_3] : memref<1x384xf32, #tpu.memory_space<vmem>>, vector<1x384xf32>
    %cst = arith.constant 0.000000e+00 : f32
    %3 = vector.broadcast %cst : f32 to vector<8x128xf32>
    %c0_4 = arith.constant 0 : index
    %c0_5 = arith.constant 0 : index
    %4 = vector.load %arg7[%c0_4, %c0_5] : memref<8x640xf32, #tpu.memory_space<vmem>>, vector<8x128xf32>
    tpu.vector_store %arg7[%c0_4, %c0_5], %3 {strides = array<i32>} : memref<8x640xf32, #tpu.memory_space<vmem>>, vector<8x128xf32>,
    %cst_6 = arith.constant 0.000000e+00 : f32
    %5 = vector.broadcast %cst_6 : f32 to vector<8x128xf32>
    %c0_7 = arith.constant 0 : index
    %c512 = arith.constant 512 : index
    %6 = vector.load %arg7[%c0_7, %c512] : memref<8x640xf32, #tpu.memory_space<vmem>>, vector<8x128xf32>
    tpu.vector_store %arg7[%c0_7, %c512], %5 {strides = array<i32>} : memref<8x640xf32, #tpu.memory_space<vmem>>, vector<8x128xf32>,
    %c0_8 = arith.constant 0 : index
    %c128 = arith.constant 128 : index
    %7 = vector.load %arg7[%c0_8, %c128] : memref<8x640xf32, #tpu.memory_space<vmem>>, vector<8x384xf32>
    tpu.vector_store %arg7[%c0_8, %c128], %1 {strides = array<i32>} : memref<8x640xf32, #tpu.memory_space<vmem>>, vector<8x384xf32>,
    %c0_9 = arith.constant 0 : index
    %c109 = arith.constant 109 : index
    %8 = vector.load %arg7[%c0_9, %c109] : memref<8x640xf32, #tpu.memory_space<vmem>>, vector<8x384xf32>
    %c0_10 = arith.constant 0 : index
    %c0_11 = arith.constant 0 : index
    %9 = vector.load %arg8[%c0_10, %c0_11] : memref<72x384xf32, #tpu.memory_space<vmem>>, vector<8x384xf32>
    tpu.vector_store %arg8[%c0_10, %c0_11], %8 {strides = array<i32>} : memref<72x384xf32, #tpu.memory_space<vmem>>, vector<8x384xf32>,
    %c0_12 = arith.constant 0 : index
    %c110 = arith.constant 110 : index
    %10 = vector.load %arg7[%c0_12, %c110] : memref<8x640xf32, #tpu.memory_space<vmem>>, vector<8x384xf32>
    %c8 = arith.constant 8 : index
    %c0_13 = arith.constant 0 : index
    %11 = vector.load %arg8[%c8, %c0_13] : memref<72x384xf32, #tpu.memory_space<vmem>>, vector<8x384xf32>
    tpu.vector_store %arg8[%c8, %c0_13], %10 {strides = array<i32>} : memref<72x384xf32, #tpu.memory_space<vmem>>, vector<8x384xf32>,
    %c0_14 = arith.constant 0 : index
    %c111 = arith.constant 111 : index
    %12 = vector.load %arg7[%c0_14, %c111] : memref<8x640xf32, #tpu.memory_space<vmem>>, vector<8x384xf32>
    %c16 = arith.constant 16 : index
    %c0_15 = arith.constant 0 : index
    %13 = vector.load %arg8[%c16, %c0_15] : memref<72x384xf32, #tpu.memory_space<vmem>>, vector<8x384xf32>
    tpu.vector_store %arg8[%c16, %c0_15], %12 {strides = array<i32>} : memref<72x384xf32, #tpu.memory_space<vmem>>, vector<8x384xf32>,
    %c0_16 = arith.constant 0 : index
    %c127 = arith.constant 127 : index
    %14 = vector.load %arg7[%c0_16, %c127] : memref<8x640xf32, #tpu.memory_space<vmem>>, vector<8x384xf32>
    %c24 = arith.constant 24 : index
    %c0_17 = arith.constant 0 : index
    %15 = vector.load %arg8[%c24, %c0_17] : memref<72x384xf32, #tpu.memory_space<vmem>>, vector<8x384xf32>
    tpu.vector_store %arg8[%c24, %c0_17], %14 {strides = array<i32>} : memref<72x384xf32, #tpu.memory_space<vmem>>, vector<8x384xf32>,
    %c0_18 = arith.constant 0 : index
    %c128_19 = arith.constant 128 : index
    %16 = vector.load %arg7[%c0_18, %c128_19] : memref<8x640xf32, #tpu.memory_space<vmem>>, vector<8x384xf32>
    %c32 = arith.constant 32 : index
    %c0_20 = arith.constant 0 : index
    %17 = vector.load %arg8[%c32, %c0_20] : memref<72x384xf32, #tpu.memory_space<vmem>>, vector<8x384xf32>
    tpu.vector_store %arg8[%c32, %c0_20], %16 {strides = array<i32>} : memref<72x384xf32, #tpu.memory_space<vmem>>, vector<8x384xf32>,
    %c0_21 = arith.constant 0 : index
    %c129 = arith.constant 129 : index
    %18 = vector.load %arg7[%c0_21, %c129] : memref<8x640xf32, #tpu.memory_space<vmem>>, vector<8x384xf32>
    %c40 = arith.constant 40 : index
    %c0_22 = arith.constant 0 : index
    %19 = vector.load %arg8[%c40, %c0_22] : memref<72x384xf32, #tpu.memory_space<vmem>>, vector<8x384xf32>
    tpu.vector_store %arg8[%c40, %c0_22], %18 {strides = array<i32>} : memref<72x384xf32, #tpu.memory_space<vmem>>, vector<8x384xf32>,
    %c0_23 = arith.constant 0 : index
    %c145 = arith.constant 145 : index
    %20 = vector.load %arg7[%c0_23, %c145] : memref<8x640xf32, #tpu.memory_space<vmem>>, vector<8x384xf32>
    %c48 = arith.constant 48 : index
    %c0_24 = arith.constant 0 : index
    %21 = vector.load %arg8[%c48, %c0_24] : memref<72x384xf32, #tpu.memory_space<vmem>>, vector<8x384xf32>
    tpu.vector_store %arg8[%c48, %c0_24], %20 {strides = array<i32>} : memref<72x384xf32, #tpu.memory_space<vmem>>, vector<8x384xf32>,
    %c0_25 = arith.constant 0 : index
    %c146 = arith.constant 146 : index
    %22 = vector.load %arg7[%c0_25, %c146] : memref<8x640xf32, #tpu.memory_space<vmem>>, vector<8x384xf32>
    %c56 = arith.constant 56 : index
    %c0_26 = arith.constant 0 : index
    %23 = vector.load %arg8[%c56, %c0_26] : memref<72x384xf32, #tpu.memory_space<vmem>>, vector<8x384xf32>
    tpu.vector_store %arg8[%c56, %c0_26], %22 {strides = array<i32>} : memref<72x384xf32, #tpu.memory_space<vmem>>, vector<8x384xf32>,
    %c0_27 = arith.constant 0 : index
    %c147 = arith.constant 147 : index
    %24 = vector.load %arg7[%c0_27, %c147] : memref<8x640xf32, #tpu.memory_space<vmem>>, vector<8x384xf32>
    %c64 = arith.constant 64 : index
    %c0_28 = arith.constant 0 : index
    %25 = vector.load %arg8[%c64, %c0_28] : memref<72x384xf32, #tpu.memory_space<vmem>>, vector<8x384xf32>
    tpu.vector_store %arg8[%c64, %c0_28], %24 {strides = array<i32>} : memref<72x384xf32, #tpu.memory_space<vmem>>, vector<8x384xf32>,
    %c0_29 = arith.constant 0 : index
    %c0_30 = arith.constant 0 : index
    %c0_31 = arith.constant 0 : index
    %26 = vector.load %arg2[%c0_29, %c0_30, %c0_31] : memref<2x8x72xf32, #tpu.memory_space<vmem>>, vector<1x8x72xf32>
    %27 = vector.shape_cast %26 : vector<1x8x72xf32> to vector<8x72xf32>
    %c0_32 = arith.constant 0 : index
    %c0_33 = arith.constant 0 : index
    %28 = vector.load %arg8[%c0_32, %c0_33] : memref<72x384xf32, #tpu.memory_space<vmem>>, vector<72x384xf32>
    %cst_34 = arith.constant dense<0.000000e+00> : vector<8x384xf32>
    %29 = tpu.matmul %27, %28, %cst_34 {dimension_numbers = #tpu.dot_dimension_numbers<[1], [0], [0], [1], [0, 0, 1, 1], [], []>} : vector<8x72xf32>, vector<72x384xf32>, vector<8x384xf32> -> vector<8x384xf32>
    %c0_35 = arith.constant 0 : index
    %c0_36 = arith.constant 0 : index
    %c0_37 = arith.constant 0 : index
    %30 = vector.load %arg3[%c0_35, %c0_36, %c0_37] : memref<2x8x1xf32, #tpu.memory_space<vmem>>, vector<1x8x1xf32>
    %31 = vector.shape_cast %30 : vector<1x8x1xf32> to vector<8x1xf32>
    %32 = vector.broadcast %31 : vector<8x1xf32> to vector<8x384xf32>
    %33 = arith.mulf %29, %32 : vector<8x384xf32>
    %c0_38 = arith.constant 0 : index
    %c0_39 = arith.constant 0 : index
    %c0_40 = arith.constant 0 : index
    %34 = vector.load %arg4[%c0_38, %c0_39, %c0_40] : memref<2x8x1xf32, #tpu.memory_space<vmem>>, vector<1x8x1xf32>
    %35 = vector.shape_cast %34 : vector<1x8x1xf32> to vector<8x1xf32>
    %36 = vector.broadcast %35 : vector<8x1xf32> to vector<8x384xf32>
    %37 = arith.addf %33, %36 : vector<8x384xf32>
    %cst_41 = arith.constant 0.000000e+00 : f32
    %38 = vector.broadcast %cst_41 : f32 to vector<8x384xf32>
    %39 = arith.maximumf %37, %38 : vector<8x384xf32>
    %40 = arith.addf %1, %39 : vector<8x384xf32>
    %41 = vector.broadcast %2 : vector<1x384xf32> to vector<8x384xf32>
    %42 = arith.mulf %39, %41 : vector<8x384xf32>
    %c0_42 = arith.constant 0 : index
    %c128_43 = arith.constant 128 : index
    %43 = vector.load %arg7[%c0_42, %c128_43] : memref<8x640xf32, #tpu.memory_space<vmem>>, vector<8x384xf32>
    tpu.vector_store %arg7[%c0_42, %c128_43], %42 {strides = array<i32>} : memref<8x640xf32, #tpu.memory_space<vmem>>, vector<8x384xf32>,
    %c0_44 = arith.constant 0 : index
    %c109_45 = arith.constant 109 : index
    %44 = vector.load %arg7[%c0_44, %c109_45] : memref<8x640xf32, #tpu.memory_space<vmem>>, vector<8x384xf32>
    %c0_46 = arith.constant 0 : index
    %c0_47 = arith.constant 0 : index
    %45 = vector.load %arg8[%c0_46, %c0_47] : memref<72x384xf32, #tpu.memory_space<vmem>>, vector<8x384xf32>
    tpu.vector_store %arg8[%c0_46, %c0_47], %44 {strides = array<i32>} : memref<72x384xf32, #tpu.memory_space<vmem>>, vector<8x384xf32>,
    %c0_48 = arith.constant 0 : index
    %c110_49 = arith.constant 110 : index
    %46 = vector.load %arg7[%c0_48, %c110_49] : memref<8x640xf32, #tpu.memory_space<vmem>>, vector<8x384xf32>
    %c8_50 = arith.constant 8 : index
    %c0_51 = arith.constant 0 : index
    %47 = vector.load %arg8[%c8_50, %c0_51] : memref<72x384xf32, #tpu.memory_space<vmem>>, vector<8x384xf32>
    tpu.vector_store %arg8[%c8_50, %c0_51], %46 {strides = array<i32>} : memref<72x384xf32, #tpu.memory_space<vmem>>, vector<8x384xf32>,
    %c0_52 = arith.constant 0 : index
    %c111_53 = arith.constant 111 : index
    %48 = vector.load %arg7[%c0_52, %c111_53] : memref<8x640xf32, #tpu.memory_space<vmem>>, vector<8x384xf32>
    %c16_54 = arith.constant 16 : index
    %c0_55 = arith.constant 0 : index
    %49 = vector.load %arg8[%c16_54, %c0_55] : memref<72x384xf32, #tpu.memory_space<vmem>>, vector<8x384xf32>
    tpu.vector_store %arg8[%c16_54, %c0_55], %48 {strides = array<i32>} : memref<72x384xf32, #tpu.memory_space<vmem>>, vector<8x384xf32>,
    %c0_56 = arith.constant 0 : index
    %c127_57 = arith.constant 127 : index
    %50 = vector.load %arg7[%c0_56, %c127_57] : memref<8x640xf32, #tpu.memory_space<vmem>>, vector<8x384xf32>
    %c24_58 = arith.constant 24 : index
    %c0_59 = arith.constant 0 : index
    %51 = vector.load %arg8[%c24_58, %c0_59] : memref<72x384xf32, #tpu.memory_space<vmem>>, vector<8x384xf32>
    tpu.vector_store %arg8[%c24_58, %c0_59], %50 {strides = array<i32>} : memref<72x384xf32, #tpu.memory_space<vmem>>, vector<8x384xf32>,
    %c0_60 = arith.constant 0 : index
    %c128_61 = arith.constant 128 : index
    %52 = vector.load %arg7[%c0_60, %c128_61] : memref<8x640xf32, #tpu.memory_space<vmem>>, vector<8x384xf32>
    %c32_62 = arith.constant 32 : index
    %c0_63 = arith.constant 0 : index
    %53 = vector.load %arg8[%c32_62, %c0_63] : memref<72x384xf32, #tpu.memory_space<vmem>>, vector<8x384xf32>
    tpu.vector_store %arg8[%c32_62, %c0_63], %52 {strides = array<i32>} : memref<72x384xf32, #tpu.memory_space<vmem>>, vector<8x384xf32>,
    %c0_64 = arith.constant 0 : index
    %c129_65 = arith.constant 129 : index
    %54 = vector.load %arg7[%c0_64, %c129_65] : memref<8x640xf32, #tpu.memory_space<vmem>>, vector<8x384xf32>
    %c40_66 = arith.constant 40 : index
    %c0_67 = arith.constant 0 : index
    %55 = vector.load %arg8[%c40_66, %c0_67] : memref<72x384xf32, #tpu.memory_space<vmem>>, vector<8x384xf32>
    tpu.vector_store %arg8[%c40_66, %c0_67], %54 {strides = array<i32>} : memref<72x384xf32, #tpu.memory_space<vmem>>, vector<8x384xf32>,
    %c0_68 = arith.constant 0 : index
    %c145_69 = arith.constant 145 : index
    %56 = vector.load %arg7[%c0_68, %c145_69] : memref<8x640xf32, #tpu.memory_space<vmem>>, vector<8x384xf32>
    %c48_70 = arith.constant 48 : index
    %c0_71 = arith.constant 0 : index
    %57 = vector.load %arg8[%c48_70, %c0_71] : memref<72x384xf32, #tpu.memory_space<vmem>>, vector<8x384xf32>
    tpu.vector_store %arg8[%c48_70, %c0_71], %56 {strides = array<i32>} : memref<72x384xf32, #tpu.memory_space<vmem>>, vector<8x384xf32>,
    %c0_72 = arith.constant 0 : index
    %c146_73 = arith.constant 146 : index
    %58 = vector.load %arg7[%c0_72, %c146_73] : memref<8x640xf32, #tpu.memory_space<vmem>>, vector<8x384xf32>
    %c56_74 = arith.constant 56 : index
    %c0_75 = arith.constant 0 : index
    %59 = vector.load %arg8[%c56_74, %c0_75] : memref<72x384xf32, #tpu.memory_space<vmem>>, vector<8x384xf32>
    tpu.vector_store %arg8[%c56_74, %c0_75], %58 {strides = array<i32>} : memref<72x384xf32, #tpu.memory_space<vmem>>, vector<8x384xf32>,
    %c0_76 = arith.constant 0 : index
    %c147_77 = arith.constant 147 : index
    %60 = vector.load %arg7[%c0_76, %c147_77] : memref<8x640xf32, #tpu.memory_space<vmem>>, vector<8x384xf32>
    %c64_78 = arith.constant 64 : index
    %c0_79 = arith.constant 0 : index
    %61 = vector.load %arg8[%c64_78, %c0_79] : memref<72x384xf32, #tpu.memory_space<vmem>>, vector<8x384xf32>
    tpu.vector_store %arg8[%c64_78, %c0_79], %60 {strides = array<i32>} : memref<72x384xf32, #tpu.memory_space<vmem>>, vector<8x384xf32>,
    %c1 = arith.constant 1 : index
    %c0_80 = arith.constant 0 : index
    %c0_81 = arith.constant 0 : index
    %62 = vector.load %arg2[%c1, %c0_80, %c0_81] : memref<2x8x72xf32, #tpu.memory_space<vmem>>, vector<1x8x72xf32>
    %63 = vector.shape_cast %62 : vector<1x8x72xf32> to vector<8x72xf32>
    %c0_82 = arith.constant 0 : index
    %c0_83 = arith.constant 0 : index
    %64 = vector.load %arg8[%c0_82, %c0_83] : memref<72x384xf32, #tpu.memory_space<vmem>>, vector<72x384xf32>
    %cst_84 = arith.constant dense<0.000000e+00> : vector<8x384xf32>
    %65 = tpu.matmul %63, %64, %cst_84 {dimension_numbers = #tpu.dot_dimension_numbers<[1], [0], [0], [1], [0, 0, 1, 1], [], []>} : vector<8x72xf32>, vector<72x384xf32>, vector<8x384xf32> -> vector<8x384xf32>
    %c1_85 = arith.constant 1 : index
    %c0_86 = arith.constant 0 : index
    %c0_87 = arith.constant 0 : index
    %66 = vector.load %arg3[%c1_85, %c0_86, %c0_87] : memref<2x8x1xf32, #tpu.memory_space<vmem>>, vector<1x8x1xf32>
    %67 = vector.shape_cast %66 : vector<1x8x1xf32> to vector<8x1xf32>
    %68 = vector.broadcast %67 : vector<8x1xf32> to vector<8x384xf32>
    %69 = arith.mulf %65, %68 : vector<8x384xf32>
    %c1_88 = arith.constant 1 : index
    %c0_89 = arith.constant 0 : index
    %c0_90 = arith.constant 0 : index
    %70 = vector.load %arg4[%c1_88, %c0_89, %c0_90] : memref<2x8x1xf32, #tpu.memory_space<vmem>>, vector<1x8x1xf32>
    %71 = vector.shape_cast %70 : vector<1x8x1xf32> to vector<8x1xf32>
    %72 = vector.broadcast %71 : vector<8x1xf32> to vector<8x384xf32>
    %73 = arith.addf %69, %72 : vector<8x384xf32>
    %cst_91 = arith.constant 0.000000e+00 : f32
    %74 = vector.broadcast %cst_91 : f32 to vector<8x384xf32>
    %75 = arith.maximumf %73, %74 : vector<8x384xf32>
    %76 = arith.addf %40, %75 : vector<8x384xf32>
    %c0_92 = arith.constant 0 : index
    %c0_93 = arith.constant 0 : index
    %c0_94 = arith.constant 0 : index
    %77 = vector.load %arg6[%c0_92, %c0_93, %c0_94] : memref<1x8x384xf32, #tpu.memory_space<vmem>>, vector<1x8x384xf32>
    %78 = vector.shape_cast %77 : vector<1x8x384xf32> to vector<8x384xf32>
    %79 = vector.shape_cast %76 : vector<8x384xf32> to vector<1x8x384xf32>
    tpu.vector_store %arg6[%c0_92, %c0_93, %c0_94], %79 {strides = array<i32>} : memref<1x8x384xf32, #tpu.memory_space<vmem>>, vector<1x8x384xf32>,
    return
  }
  func.func @transform_0(%arg0: i32) -> (i32, i32, i32) {
    %c0_i32 = arith.constant 0 : i32
    %c0_i32_0 = arith.constant 0 : i32
    %c0_i32_1 = arith.constant 0 : i32
    return %arg0, %c0_i32, %c0_i32_0 : i32, i32, i32
  }
  func.func @transform_1(%arg0: i32) -> (i32, i32, i32) {
    %c0_i32 = arith.constant 0 : i32
    %c0_i32_0 = arith.constant 0 : i32
    %c0_i32_1 = arith.constant 0 : i32
    %c0_i32_2 = arith.constant 0 : i32
    return %c0_i32, %c0_i32_0, %c0_i32_1 : i32, i32, i32
  }
  func.func @transform_2(%arg0: i32) -> (i32, i32, i32) {
    %c0_i32 = arith.constant 0 : i32
    %c0_i32_0 = arith.constant 0 : i32
    %c0_i32_1 = arith.constant 0 : i32
    %c0_i32_2 = arith.constant 0 : i32
    return %c0_i32, %c0_i32_0, %c0_i32_1 : i32, i32, i32
  }
  func.func @transform_3(%arg0: i32) -> (i32, i32, i32) {
    %c0_i32 = arith.constant 0 : i32
    %c0_i32_0 = arith.constant 0 : i32
    %c0_i32_1 = arith.constant 0 : i32
    %c0_i32_2 = arith.constant 0 : i32
    return %c0_i32, %c0_i32_0, %c0_i32_1 : i32, i32, i32
  }
  func.func @transform_4(%arg0: i32) -> (i32, i32) {
    %c0_i32 = arith.constant 0 : i32
    %c0_i32_0 = arith.constant 0 : i32
    %c0_i32_1 = arith.constant 0 : i32
    return %c0_i32, %c0_i32_0 : i32, i32
  }
  func.func @transform_5(%arg0: i32) -> (i32, i32, i32) {
    %c0_i32 = arith.constant 0 : i32
    %c0_i32_0 = arith.constant 0 : i32
    %c0_i32_1 = arith.constant 0 : i32
    return %arg0, %c0_i32, %c0_i32_0 : i32, i32, i32
  }
}

</mosaic_0001>

<bundles_post_ra>
// kernel: basic_block_forward.1
= control target key start
LH: loop header
LB: loop body
LE: loop exit
PB: predicated region body
PF: predicated region fallthrough
CT: control target
= control target key end

     0   :  { %s1279_s18 = smov 0   ;;  %s1576_s0 = inlined_call_operand.vmem [shape: f32[2,8,384], index: 0, kind: input, shape index: {}]   ;;  %s1577_s1 = inlined_call_operand.vmem [shape: f32[2,8,72], index: 1, kind: input, shape index: {}]   ;;  %s1578_s2 = inlined_call_operand.vmem [shape: f32[2,8,1], index: 2, kind: input, shape index: {}]   ;;  %s1579_s3 = inlined_call_operand.vmem [shape: f32[2,8,1], index: 3, kind: input, shape index: {}]   ;;  %s1580_s4 = inlined_call_operand.vmem [shape: f32[1,384], index: 4, kind: input, shape index: {}]   ;;  %s1581_s5 = inlined_call_operand.vmem [shape: f32[2,8,384], index: 5, kind: output, shape index: {}]  }
   0x1 LB: > { %s1130_s19 = sadd.s32 4294967295, %s1236_s18   ;;  %p1134_p0 = scmp.ge.s32.totalorder %s1236_s18, 1  ;;  %s1236_s18 = sphi %s1279_s18, %s15_s18  }
   0x2   : > { %p187_p1 = scmp.lt.s32.totalorder %s1236_s18, 3 }
   0x4   : > { %p188_p2 = pnand %p1134_p0, %p187_p1 }
   0x5   : > { %p215_p3 = scmp.lt.s32.totalorder (!%p188_p2), %s1130_s19, 1  ;;  %s1239_s24 = smov (!%p188_p2), 109  }
   0x6   : > { %191 = sbr.rel (%p188_p2) target bundleno = 763 (0x2fb), region = 40  ;;  %s1240_s25 = smov (!%p188_p2), 110  }
   0x7   : > { %s1241_s26 = smov (!%p188_p2), 111   ;;  %s1242_s27 = smov (!%p188_p2), 127  }
   0x8   : > { %s1243_s28 = smov (!%p188_p2), 1   ;;  %s1244_s29 = smov (!%p188_p2), 17  }
   0x9   : > { %s1245_s30 = smov (!%p188_p2), 18   ;;  %s1247_s6 = smov (!%p188_p2), 19  }
   0xb   : > { %v1238_v0 = vmov 0.0   ;;  %s1583_s19 = smov (!%p215_p3, %s1130_s19), 1  ;;  %vm1246_vm0 = vmmov 0   ;;  %v1248_v4 = vmov 0   ;;  %v621_v5 = vld [vmem:[%s1578_s2] sm:$0xff]  ;;  %vm438_vm1 = vcmask 891904  }
   0xc   : > { %1166 = vmatprep.subr.mxu1 %v1238_v0  ;;  %544 = vmatprep.mubr.f32.mxu0 %v1238_v0  ;;  %s1208_s20 = smul.u32 24, %s1583_s19  ;;  %v630_v6 = vld [vmem:[%s1579_s3] sm:$0xff]  ;;  %vm412_vm2 = vcmask 900096   ;;  %vm386_vm3 = vcmask 908288   ;;  %vm360_vm4 = vcmask 1039360   ;;  %vm328_vm5 = vcmask 7168  }
   0xd   : > { %1184 = vmatprep.mubr.msk.f32.mxu1 %vm1246_vm0, %v1238_v0  ;;  %1228 = vset.pattern.permute.xlu0 %v1248_v4  ;;  %vm302_vm6 = vcmask 138240   ;;  %vm276_vm7 = vcmask 146432   ;;  %vm250_vm8 = vcmask 154624   ;;  %v448_v59 = vld [vmem:[%s1577_s1] sm:$0xff]  ;;  %vm476_vm9 = vcmask 588800  }
   0xe   : > { %s219_s23 = scalar_lea.vmem %s1576_s0, %s1208_s20  ;;  %1229 = vset.pattern.permute.xlu1 %v1248_v4  ;;  %v646_v4 = vlaneseq }
   0xf   : > { %v1297_v1 = vld [vmem:[%s219_s23 + $0x8] sm:$0xff]  ;;  %v1299_v2 = vld [vmem:[%s219_s23] sm:$0xff]  ;;  %v1305_v3 = vld [vmem:[%s219_s23 + $0x10] sm:$0xff] }
  0x10   : > { %432 = vrot.lane.b32.xlu0 %v1297_v1, %s1239_s24  ;;  %430 = vrot.lane.b32.xlu1 %v1299_v2, %s1239_s24 }
  0x14   : > { %434 = vrot.lane.b32.xlu0 %v1305_v3, %s1239_s24  ;;  %406 = vrot.lane.b32.xlu1 %v1297_v1, %s1240_s25 }
  0x18   : > { %408 = vrot.lane.b32.xlu0 %v1305_v3, %s1240_s25  ;;  %404 = vrot.lane.b32.xlu1 %v1299_v2, %s1240_s25 }
  0x1c   : > { %436 = vrot.lane.b32.xlu0 %v1238_v0, %s1239_s24  ;;  %380 = vrot.lane.b32.xlu1 %v1297_v1, %s1241_s26 }
  0x20   : > { %382 = vrot.lane.b32.xlu0 %v1305_v3, %s1241_s26  ;;  %378 = vrot.lane.b32.xlu1 %v1299_v2, %s1241_s26 }
  0x24   : > { %410 = vrot.lane.b32.xlu0 %v1238_v0, %s1240_s25  ;;  %354 = vrot.lane.b32.xlu1 %v1297_v1, %s1242_s27 }
  0x28   : > { %356 = vrot.lane.b32.xlu0 %v1305_v3, %s1242_s27  ;;  %352 = vrot.lane.b32.xlu1 %v1299_v2, %s1242_s27 }
  0x2c   : > { %384 = vrot.lane.b32.xlu0 %v1238_v0, %s1241_s26  ;;  %358 = vrot.lane.b32.xlu1 %v1238_v0, %s1242_s27 }
  0x30   : > { %322 = vrot.lane.b32.xlu0 %v1299_v2, %s1243_s28  ;;  %324 = vrot.lane.b32.xlu1 %v1297_v1, %s1243_s28 }
  0x34   : > { %320 = vrot.lane.b32.xlu0 %v1238_v0, %s1243_s28  ;;  %296 = vrot.lane.b32.xlu1 %v1299_v2, %s1244_s29 }
  0x38   : > { %298 = vrot.lane.b32.xlu0 %v1297_v1, %s1244_s29  ;;  %294 = vrot.lane.b32.xlu1 %v1238_v0, %s1244_s29 }
  0x3c   : > { %326 = vrot.lane.b32.xlu0 %v1305_v3, %s1243_s28  ;;  %270 = vrot.lane.b32.xlu1 %v1299_v2, %s1245_s30 }
  0x40   : > { %272 = vrot.lane.b32.xlu0 %v1297_v1, %s1245_s30  ;;  %268 = vrot.lane.b32.xlu1 %v1238_v0, %s1245_s30 }
  0x44   : > { %300 = vrot.lane.b32.xlu0 %v1305_v3, %s1244_s29  ;;  %244 = vrot.lane.b32.xlu1 %v1299_v2, %s1247_s6 }
  0x48   : > { %246 = vrot.lane.b32.xlu0 %v1297_v1, %s1247_s6  ;;  %242 = vrot.lane.b32.xlu1 %v1238_v0, %s1247_s6 }
  0x4c   : > { %274 = vrot.lane.b32.xlu0 %v1305_v3, %s1245_s30  ;;  %248 = vrot.lane.b32.xlu1 %v1305_v3, %s1247_s6 }
  0x50   : > { %624 = vperm.xlu0 %1228, %v621_v5   ;;  %633 = vperm.xlu1 %1229, %v630_v6   ;;  %v647_v5 = vshrl.u32 %v646_v4, 7 }
  0x54   : > { %862 = vrot.lane.b32.xlu1 %v1238_v0, %s1239_s24  ;;  %787 = vrot.lane.b32.xlu0 %v1238_v0, %s1242_s27 }
  0x58   : > { %837 = vrot.lane.b32.xlu1 %v1238_v0, %s1240_s25  ;;  %725 = vrot.lane.b32.xlu0 %v1238_v0, %s1244_s29 }
  0x5c   : > { %812 = vrot.lane.b32.xlu1 %v1238_v0, %s1241_s26  ;;  %700 = vrot.lane.b32.xlu0 %v1238_v0, %s1245_s30 }
  0x60   : > { %750 = vrot.lane.b32.xlu1 %v1238_v0, %s1243_s28 }
  0x82   : > { %v433_v7 = vpop.permute.xlu0 %432  ;;  %v431_v8 = vpop.permute.xlu1 %430 }
  0x83   : > { %v439_v12 = vsel %vm438_vm1, %v431_v8, %v433_v7 }
  0x86   : > { %v435_v9 = vpop.permute.xlu0 %434  ;;  %v407_v10 = vpop.permute.xlu1 %406 }
  0x87   : > { %v440_v11 = vsel %vm438_vm1, %v433_v7, %v435_v9 }
  0x88   : > { %494 = vmatprep.subr.mxu0 %v440_v11  ;;  %v228_v11 = vld [vmem:[%s1580_s4] sm:$0x7] }
  0x89   : > { %495 = vmatpush1.msra.mxu0 %v439_v12 }
  0x8a   : > { %v409_v13 = vpop.permute.xlu0 %408  ;;  %v405_v14 = vpop.permute.xlu1 %404 }
  0x8b   : > { %v414_v15 = vsel %vm412_vm2, %v407_v10, %v409_v13  ;;  %v413_v16 = vsel %vm412_vm2, %v405_v14, %v407_v10 }
  0x8c   : > { %496 = vmatprep.subr.mxu0 %v414_v15  ;;  %v648_v15 = vsub.s32 0, %v647_v5 }
  0x8d   : > { %497 = vmatpush1.msra.mxu0 %v413_v16 }
  0x8e   : > { %v437_v17 = vpop.permute.xlu0 %436  ;;  %v381_v18 = vpop.permute.xlu1 %380 }
  0x8f   : > { %v441_v19 = vsel %vm438_vm1, %v435_v9, %v437_v17  ;;  %v656_v9 = vsub.s32 2, %v647_v5 }
  0x90   : > { %1167 = vmatpush3.msra.mxu1 %v441_v19 }
  0x91   : > { %1168 = vmatprep.subr.mxu1 %v1238_v0  ;;  %v657_v16 = vrot.slane %v228_v11, %v656_v9 }
  0x92   : > { %v383_v20 = vpop.permute.xlu0 %382  ;;  %v379_v21 = vpop.permute.xlu1 %378 }
  0x93   : > { %v388_v22 = vsel %vm386_vm3, %v381_v18, %v383_v20  ;;  %v387_v23 = vsel %vm386_vm3, %v379_v21, %v381_v18 }
  0x94   : > { %498 = vmatprep.subr.mxu0 %v388_v22 }
  0x95   : > { %499 = vmatpush1.msra.mxu0 %v387_v23 }
  0x96   : > { %v411_v24 = vpop.permute.xlu0 %410  ;;  %v355_v25 = vpop.permute.xlu1 %354 }
  0x97   : > { %v415_v26 = vsel %vm412_vm2, %v409_v13, %v411_v24 }
  0x98   : > { %1169 = vmatpush3.msra.mxu1 %v415_v26  ;;  %v652_v26 = vsub.s32 1, %v647_v5 }
  0x99   : > { %1170 = vmatprep.subr.mxu1 %v1238_v0 }
  0x9a   : > { %v357_v27 = vpop.permute.xlu0 %356  ;;  %v353_v28 = vpop.permute.xlu1 %352 }
  0x9b   : > { %v362_v29 = vsel %vm360_vm4, %v355_v25, %v357_v27  ;;  %v361_v30 = vsel %vm360_vm4, %v353_v28, %v355_v25  ;;  %v653_v28 = vrot.slane %v228_v11, %v652_v26 }
  0x9c   : > { %500 = vmatprep.subr.mxu0 %v362_v29 }
  0x9d   : > { %501 = vmatpush1.msra.mxu0 %v361_v30 }
  0x9e   : > { %v385_v31 = vpop.permute.xlu0 %384  ;;  %v359_v32 = vpop.permute.xlu1 %358  ;;  %502 = vmatprep.subr.mxu0 %v1297_v1 }
  0x9f   : > { %v389_v33 = vsel %vm386_vm3, %v383_v20, %v385_v31  ;;  %503 = vmatpush1.msra.mxu0 %v1299_v2  ;;  %v363_v34 = vsel %vm360_vm4, %v357_v27, %v359_v32  ;;  %v649_v20 = vrot.slane %v228_v11, %v648_v15  ;;  %v1142_v31 = vld [vmem:[%s1578_s2 + $0x8] sm:$0xff] }
  0xa0   : > { %1171 = vmatpush3.msra.mxu1 %v389_v33  ;;  %v1143_v32 = vld [vmem:[%s1579_s3 + $0x8] sm:$0xff] }
  0xa1   : > { %1172 = vmatprep.subr.mxu1 %v1238_v0 }
  0xa2   : > { %v323_v35 = vpop.permute.xlu0 %322  ;;  %1173 = vmatpush3.msra.mxu1 %v363_v34  ;;  %v325_v36 = vpop.permute.xlu1 %324 }
  0xa3   : > { %v330_v37 = vsel %vm328_vm5, %v323_v35, %v325_v36  ;;  %1174 = vmatprep.subr.mxu1 %v1238_v0 }
  0xa4   : > { %504 = vmatprep.subr.mxu0 %v330_v37  ;;  %1175 = vmatpush3.msra.mxu1 %v1305_v3 }
  0xa5   : > { %1176 = vmatprep.subr.mxu1 %v1238_v0 }
  0xa6   : > { %v321_v38 = vpop.permute.xlu0 %320  ;;  %v297_v39 = vpop.permute.xlu1 %296 }
  0xa7   : > { %v329_v40 = vsel %vm328_vm5, %v321_v38, %v323_v35 }
  0xa8   : > { %505 = vmatpush1.msra.mxu0 %v329_v40 }
  0xaa   : > { %v299_v41 = vpop.permute.xlu0 %298  ;;  %v295_v42 = vpop.permute.xlu1 %294 }
  0xab   : > { %v304_v43 = vsel %vm302_vm6, %v297_v39, %v299_v41  ;;  %v303_v44 = vsel %vm302_vm6, %v295_v42, %v297_v39 }
  0xac   : > { %506 = vmatprep.subr.mxu0 %v304_v43 }
  0xad   : > { %507 = vmatpush1.msra.mxu0 %v303_v44 }
  0xae   : > { %v327_v45 = vpop.permute.xlu0 %326  ;;  %v271_v46 = vpop.permute.xlu1 %270 }
  0xaf   : > { %v331_v47 = vsel %vm328_vm5, %v325_v36, %v327_v45 }
  0xb0   : > { %1177 = vmatpush3.msra.mxu1 %v331_v47 }
  0xb1   : > { %1178 = vmatprep.subr.mxu1 %v1238_v0 }
  0xb2   : > { %v273_v48 = vpop.permute.xlu0 %272  ;;  %v269_v49 = vpop.permute.xlu1 %268 }
  0xb3   : > { %v278_v50 = vsel %vm276_vm7, %v271_v46, %v273_v48  ;;  %v277_v51 = vsel %vm276_vm7, %v269_v49, %v271_v46 }
  0xb4   : > { %508 = vmatprep.subr.mxu0 %v278_v50 }
  0xb5   : > { %509 = vmatpush1.msra.mxu0 %v277_v51 }
  0xb6   : > { %v301_v52 = vpop.permute.xlu0 %300  ;;  %v245_v53 = vpop.permute.xlu1 %244 }
  0xb7   : > { %v305_v54 = vsel %vm302_vm6, %v299_v41, %v301_v52 }
  0xb8   : > { %1179 = vmatpush3.msra.mxu1 %v305_v54 }
  0xb9   : > { %1180 = vmatprep.subr.mxu1 %v1238_v0 }
  0xba   : > { %v247_v55 = vpop.permute.xlu0 %246  ;;  %v243_v56 = vpop.permute.xlu1 %242 }
  0xbb   : > { %v252_v57 = vsel %vm250_vm8, %v245_v53, %v247_v55  ;;  %v251_v58 = vsel %vm250_vm8, %v243_v56, %v245_v53 }
  0xbc   : > { %510 = vmatprep.subr.mxu0 %v252_v57 }
  0xbd   : > { %511 = vmatpush1.msra.mxu0 %v251_v58 }
  0xbe   : > { %v275_v60 = vpop.permute.xlu0 %274  ;;  %v249_v61 = vpop.permute.xlu1 %248  ;;  %1137 = vmatmul.mubr.msk.f32.vlgmr.msra.gmra.mxu0 %vm476_vm9, %v448_v59 }
  0xbf   : > { %v279_v62 = vsel %vm276_vm7, %v273_v48, %v275_v60  ;;  %969 = vmatprep.mubr.f32.mxu0 %v1238_v0  ;;  %v253_v63 = vsel %vm250_vm8, %v247_v55, %v249_v61 }
  0xc0   : > { %1181 = vmatpush3.msra.mxu1 %v279_v62 }
  0xc1   : > { %1182 = vmatprep.subr.mxu1 %v1238_v0 }
  0xc2   : > { %1183 = vmatpush3.msra.mxu1 %v253_v63 }
  0xc3   : > { %1185 = vmatmul.mubr.msk.f32.vlgmr.msra.gmra.mxu1 %vm476_vm9, %v448_v59  ;;  %1187 = vmatprep.subr.mxu1 %v1238_v0 }
  0xc4   : > { %1205 = vmatprep.mubr.msk.f32.mxu1 %vm1246_vm0, %v1238_v0 }
  0xcb   : > { %v625_v6 = vpop.permute.xlu0 %624  ;;  %v634_v12 = vpop.permute.xlu1 %633 }
  0xcf   : > { %v863_v33 = vpop.permute.xlu1 %862  ;;  %v788_v34 = vpop.permute.xlu0 %787 }
  0xd3   : > { %v838_v35 = vpop.permute.xlu1 %837  ;;  %v1513_v36 = vpop.permute.xlu0 %725 }
  0xd7   : > { %v813_v37 = vpop.permute.xlu1 %812  ;;  %v1515_v38 = vpop.permute.xlu0 %700 }
  0xdb   : > { %v751_v39 = vpop.permute.xlu1 %750 }
 0x17e   : > { %v546_v7 = vpop.f32.mrf.mxu0 }
 0x17f   : > { %v627_v8 = vmul.f32 %v625_v6, %v546_v7 }
 0x180   : > { %v548_v24 = vpop.f32.mrf.mxu0 }
 0x181   : > { %v1436_v17 = vadd.f32 %v634_v12, %v627_v8  ;;  %v628_v25 = vmul.f32 %v625_v6, %v548_v24 }
 0x183   : > { %v617_v10 = vpop.f32.mrf.mxu1  ;;  %v639_v21 = vmax.f32 %v1436_v17, 0.0  ;;  %v1466_v27 = vadd.f32 %v634_v12, %v628_v25 }
 0x184   : > { %v629_v13 = vmul.f32 %v625_v6, %v617_v10 }
 0x185   : > { %v1186_v14 = vpop.f32.mrf.mxu1  ;;  %v1452_v23 = vmul.f32 %v649_v20, %v639_v21  ;;  %v640_v29 = vmax.f32 %v1466_v27, 0.0 }
 0x186   : > { %v1438_v18 = vadd.f32 %v634_v12, %v629_v13 }
 0x187   : > { %v1479_v30 = vmul.f32 %v653_v28, %v640_v29 }
 0x188   : > { %v641_v19 = vmax.f32 %v1438_v18, 0.0 }
 0x18a   : > { %v1444_v22 = vmul.f32 %v657_v16, %v641_v19 }
 0x18c   : > { %835 = vrot.lane.b32.xlu1 %v1444_v22, %s1240_s25  ;;  %860 = vrot.lane.b32.xlu0 %v1444_v22, %s1239_s24 }
 0x190   : > { %810 = vrot.lane.b32.xlu1 %v1444_v22, %s1241_s26  ;;  %831 = vrot.lane.b32.xlu0 %v1452_v23, %s1240_s25 }
 0x194   : > { %785 = vrot.lane.b32.xlu1 %v1444_v22, %s1242_s27  ;;  %806 = vrot.lane.b32.xlu0 %v1452_v23, %s1241_s26 }
 0x198   : > { %756 = vrot.lane.b32.xlu1 %v1444_v22, %s1243_s28  ;;  %781 = vrot.lane.b32.xlu0 %v1452_v23, %s1242_s27 }
 0x19c   : > { %727 = vrot.lane.b32.xlu0 %v1452_v23, %s1244_s29  ;;  %856 = vrot.lane.b32.xlu1 %v1452_v23, %s1239_s24 }
 0x1a0   : > { %702 = vrot.lane.b32.xlu0 %v1452_v23, %s1245_s30  ;;  %752 = vrot.lane.b32.xlu1 %v1452_v23, %s1243_s28 }
 0x1a4   : > { %833 = vrot.lane.b32.xlu0 %v1479_v30, %s1240_s25  ;;  %858 = vrot.lane.b32.xlu1 %v1479_v30, %s1239_s24 }
 0x1a8   : > { %808 = vrot.lane.b32.xlu0 %v1479_v30, %s1241_s26  ;;  %731 = vrot.lane.b32.xlu1 %v1444_v22, %s1244_s29  ;;  %s224_s26 = scalar_lea.vmem %s1581_s5, %s1208_s20 }
 0x1ac   : > { %783 = vrot.lane.b32.xlu0 %v1479_v30, %s1242_s27  ;;  %729 = vrot.lane.b32.xlu1 %v1479_v30, %s1244_s29 }
 0x1b0   : > { %754 = vrot.lane.b32.xlu0 %v1479_v30, %s1243_s28  ;;  %704 = vrot.lane.b32.xlu1 %v1479_v30, %s1245_s30 }
 0x1b4   : > { %677 = vrot.lane.b32.xlu0 %v1452_v23, %s1247_s6  ;;  %679 = vrot.lane.b32.xlu1 %v1479_v30, %s1247_s6 }
 0x1b8   : > { %675 = vrot.lane.b32.xlu0 %v1238_v0, %s1247_s6  ;;  %706 = vrot.lane.b32.xlu1 %v1444_v22, %s1245_s30 }
 0x1bc   : > { %681 = vrot.lane.b32.xlu0 %v1444_v22, %s1247_s6  ;;  %1050 = vperm.xlu1 %1229, %v1142_v31   ;;  %v1139_v31 = vld [vmem:[%s1577_s1 + $0x8] sm:$0xff] }
 0x1c0   : > { %1060 = vperm.xlu0 %1228, %v1143_v32  }
 0x1fe   : > { %v861_v40 = vpop.permute.xlu0 %860  ;;  %v836_v41 = vpop.permute.xlu1 %835 }
 0x1ff   : > { %v866_v42 = vsel %vm438_vm1, %v861_v40, %v863_v33  ;;  %v841_v43 = vsel %vm412_vm2, %v836_v41, %v838_v35 }
 0x200   : > { %1188 = vmatpush3.msra.mxu1 %v866_v42 }
 0x201   : > { %1189 = vmatprep.subr.mxu1 %v1238_v0 }
 0x202   : > { %v832_v44 = vpop.permute.xlu0 %831  ;;  %1190 = vmatpush3.msra.mxu1 %v841_v43  ;;  %v811_v45 = vpop.permute.xlu1 %810 }
 0x203   : > { %v816_v46 = vsel %vm386_vm3, %v811_v45, %v813_v37  ;;  %1191 = vmatprep.subr.mxu1 %v1238_v0 }
 0x204   : > { %1192 = vmatpush3.msra.mxu1 %v816_v46 }
 0x205   : > { %1193 = vmatprep.subr.mxu1 %v1238_v0 }
 0x206   : > { %v807_v47 = vpop.permute.xlu0 %806  ;;  %v786_v48 = vpop.permute.xlu1 %785 }
 0x207   : > { %v791_v49 = vsel %vm360_vm4, %v786_v48, %v788_v34 }
 0x208   : > { %1194 = vmatpush3.msra.mxu1 %v791_v49 }
 0x209   : > { %1195 = vmatprep.subr.mxu1 %v1238_v0 }
 0x20a   : > { %v782_v50 = vpop.permute.xlu0 %781  ;;  %1196 = vmatpush3.msra.mxu1 %v1444_v22  ;;  %v757_v51 = vpop.permute.xlu1 %756 }
 0x20b   : > { %1197 = vmatprep.subr.mxu1 %v1238_v0 }
 0x20e   : > { %v728_v52 = vpop.permute.xlu0 %727  ;;  %v857_v53 = vpop.permute.xlu1 %856 }
 0x20f   : > { %v733_v20 = vsel %vm302_vm6, %v1513_v36, %v728_v52 }
 0x212   : > { %v703_v54 = vpop.permute.xlu0 %702  ;;  %v753_v55 = vpop.permute.xlu1 %752 }
 0x213   : > { %v758_v14 = vsel %vm328_vm5, %v751_v39, %v753_v55  ;;  %v708_v25 = vsel %vm276_vm7, %v1515_v38, %v703_v54 }
 0x216   : > { %v834_v56 = vpop.permute.xlu0 %833  ;;  %v859_v57 = vpop.permute.xlu1 %858 }
 0x217   : > { %v864_v58 = vsel %vm438_vm1, %v857_v53, %v859_v57  ;;  %v865_v59 = vsel %vm438_vm1, %v859_v57, %v861_v40  ;;  %v840_v60 = vsel %vm412_vm2, %v834_v56, %v836_v41  ;;  %v839_v61 = vsel %vm412_vm2, %v832_v44, %v834_v56 }
 0x218   : > { %919 = vmatprep.subr.mxu0 %v865_v59  ;;  %v642_v44 = vadd.f32 %v639_v21, %v1299_v2  ;;  %v644_v2 = vadd.f32 %v641_v19, %v1305_v3 }
 0x219   : > { %920 = vmatpush1.msra.mxu0 %v864_v58 }
 0x21a   : > { %v809_v62 = vpop.permute.xlu0 %808  ;;  %921 = vmatprep.subr.mxu0 %v840_v60  ;;  %v732_v63 = vpop.permute.xlu1 %731 }
 0x21b   : > { %v814_v4 = vsel %vm386_vm3, %v807_v47, %v809_v62  ;;  %922 = vmatpush1.msra.mxu0 %v839_v61  ;;  %v815_v5 = vsel %vm386_vm3, %v809_v62, %v811_v45 }
 0x21c   : > { %923 = vmatprep.subr.mxu0 %v815_v5 }
 0x21d   : > { %924 = vmatpush1.msra.mxu0 %v814_v4 }
 0x21e   : > { %v784_v6 = vpop.permute.xlu0 %783  ;;  %v730_v7 = vpop.permute.xlu1 %729 }
 0x21f   : > { %v789_v8 = vsel %vm360_vm4, %v782_v50, %v784_v6  ;;  %v790_v9 = vsel %vm360_vm4, %v784_v6, %v786_v48  ;;  %v735_v15 = vsel %vm302_vm6, %v730_v7, %v732_v63  ;;  %v734_v16 = vsel %vm302_vm6, %v728_v52, %v730_v7 }
 0x220   : > { %925 = vmatprep.subr.mxu0 %v790_v9  ;;  %v643_v48 = vadd.f32 %v640_v29, %v1297_v1 }
 0x221   : > { %926 = vmatpush1.msra.mxu0 %v789_v8 }
 0x222   : > { %v755_v10 = vpop.permute.xlu0 %754  ;;  %927 = vmatprep.subr.mxu0 %v1479_v30  ;;  %v705_v11 = vpop.permute.xlu1 %704 }
 0x223   : > { %v760_v12 = vsel %vm328_vm5, %v755_v10, %v757_v51  ;;  %928 = vmatpush1.msra.mxu0 %v1452_v23  ;;  %v759_v13 = vsel %vm328_vm5, %v753_v55, %v755_v10  ;;  %v709_v24 = vsel %vm276_vm7, %v703_v54, %v705_v11 }
 0x224   : > { %929 = vmatprep.subr.mxu0 %v759_v13  ;;  %1198 = vmatpush3.msra.mxu1 %v760_v12 }
 0x225   : > { %930 = vmatpush1.msra.mxu0 %v758_v14  ;;  %1199 = vmatprep.subr.mxu1 %v1238_v0 }
 0x226   : > { %v678_v22 = vpop.permute.xlu0 %677  ;;  %931 = vmatprep.subr.mxu0 %v734_v16  ;;  %1200 = vmatpush3.msra.mxu1 %v735_v15  ;;  %v680_v23 = vpop.permute.xlu1 %679 }
 0x227   : > { %932 = vmatpush1.msra.mxu0 %v733_v20  ;;  %1201 = vmatprep.subr.mxu1 %v1238_v0  ;;  %v684_v26 = vsel %vm250_vm8, %v678_v22, %v680_v23 }
 0x228   : > { %933 = vmatprep.subr.mxu0 %v709_v24 }
 0x229   : > { %934 = vmatpush1.msra.mxu0 %v708_v25 }
 0x22a   : > { %v676_v28 = vpop.permute.xlu0 %675  ;;  %935 = vmatprep.subr.mxu0 %v684_v26  ;;  %v707_v30 = vpop.permute.xlu1 %706 }
 0x22b   : > { %v683_v32 = vsel %vm250_vm8, %v676_v28, %v678_v22  ;;  %v710_v33 = vsel %vm276_vm7, %v705_v11, %v707_v30 }
 0x22c   : > { %936 = vmatpush1.msra.mxu0 %v683_v32  ;;  %1202 = vmatpush3.msra.mxu1 %v710_v33 }
 0x22d   : > { %1140 = vmatmul.mubr.msk.f32.vlgmr.msra.gmra.mxu0 %vm476_vm9, %v1139_v31  ;;  %1203 = vmatprep.subr.mxu1 %v1238_v0 }
 0x22e   : > { %v682_v34 = vpop.permute.xlu0 %681 }
 0x22f   : > { %v685_v35 = vsel %vm250_vm8, %v680_v23, %v682_v34 }
 0x230   : > { %1204 = vmatpush3.msra.mxu1 %v685_v35 }
 0x231   : > { %1206 = vmatmul.mubr.msk.f32.vlgmr.msra.gmra.mxu1 %vm476_vm9, %v1139_v31 }
 0x237   : > { %v1051_v36 = vpop.permute.xlu1 %1050 }
 0x23b   : > { %v1061_v39 = vpop.permute.xlu0 %1060 }
 0x2ed   : > { %v971_v37 = vpop.f32.mrf.mxu0 }
 0x2ee   : > { %v1053_v38 = vmul.f32 %v1051_v36, %v971_v37 }
 0x2ef   : > { %v973_v40 = vpop.f32.mrf.mxu0 }
 0x2f0   : > { %v1063_v41 = vadd.f32 %v1061_v39, %v1053_v38  ;;  %v1054_v42 = vmul.f32 %v1051_v36, %v973_v40 }
 0x2f1   : > { %v1042_v43 = vpop.f32.mrf.mxu1 }
 0x2f2   : > { %v1066_v0 = vmax.f32 %v1063_v41, 0.0  ;;  %v1064_v45 = vadd.f32 %v1061_v39, %v1054_v42  ;;  %v1055_v46 = vmul.f32 %v1051_v36, %v1042_v43 }
 0x2f3   : > { %v1207_v47 = vpop.f32.mrf.mxu1 }
 0x2f4   : > { %v1069_v49 = vadd.f32 %v1066_v0, %v642_v44  ;;  %v1067_v50 = vmax.f32 %v1064_v45, 0.0  ;;  %v1065_v51 = vadd.f32 %v1061_v39, %v1055_v46 }
 0x2f6   : > { %1072 = vst [vmem:[%s224_s26] sm:$0xff] %v1069_v49  ;;  %v1070_v17 = vadd.f32 %v1067_v50, %v643_v48  ;;  %v1068_v21 = vmax.f32 %v1065_v51, 0.0 }
 0x2f8   : > { %1073 = vst [vmem:[%s224_s26 + $0x8] sm:$0xff] %v1070_v17  ;;  %v1071_v52 = vadd.f32 %v1068_v21, %v644_v2 }
 0x2fa   : > { %1074 = vst [vmem:[%s224_s26 + $0x10] sm:$0xff] %v1071_v52 }
 0x2fb PF: > { %s15_s18 = sadd.s32 1, %s1236_s18  }
 0x2fc   : > { %p12_p4 = scmp.ge.s32.totalorder %s15_s18, 4  }
 0x2fe   :  { %14 = sbr.rel (!%p12_p4) target bundleno = 1 (0x1), region = 73 }

</bundles_post_ra>
